<compile_context>
chip_gen: v5e
topology: v5e:2x2
jax: 0.10.0
libtpu: 0.0.40
codegen_flags: <defaults>
</compile_context>

<pallas_src>
import functools

import jax
import jax.numpy as jnp
from jax.experimental import pallas as pl
from jax.experimental.pallas import tpu as pltpu


def _round_up(a, b):
    return (a + b - 1) // b * b


_TRANSCENDENTAL_ACTS = ('Sigmoid', 'Tanh', 'Softplus')


def _apply_act(out, act_func):
    if act_func == 'ReLU':
        return jnp.maximum(out, 0.0)
    if act_func == 'Sigmoid':
        return jax.nn.sigmoid(out)
    if act_func == 'Tanh':
        return jnp.tanh(out)
    if act_func == 'Softplus':
        return jax.nn.softplus(out)
    if act_func is None:
        return out
    raise NotImplementedError(act_func)


def _k_tiling(n_input):
    """K tile size + padded K.  Deterministic from n_input only, so parameters
    prepared once always match the tiling chosen at call time."""
    if n_input <= 2048:
        return n_input, n_input
    tk = 512                      # multiple of 128 -> valid last dim for X tiles
    return tk, _round_up(n_input, tk)


# ----------------------------------------------------------------------------
# Parameter preparation (do once; reuse across forward calls)
# ----------------------------------------------------------------------------
def prepare_bnn_params(w_mu, b_mu, w_sigma, b_sigma, *,
                       compute_dtype=jnp.bfloat16):
    """Pad / square / cast the parameters once, outside the per-call path.

    The returned dict can be reused across forward calls, so the per-call work
    is only the X cast/pad (and the optional eps draw) plus the kernel itself.
    Weights are stored in `compute_dtype` (bf16 by default: half HBM bytes and
    native MXU operands on v5e/v6e/v7x); biases stay f32.
    """
    n_input, n_output = w_mu.shape
    _, K_p = _k_tiling(n_input)
    n_out_p = _round_up(n_output, 128)     # lane-dense output feature dim
    f32 = jnp.float32

    def pad2(a, rows, cols, dtype):
        a = a.astype(dtype)
        r, c = a.shape
        if r == rows and c == cols:        # fast path: no padding op at all
            return a
        return jnp.pad(a, ((0, rows - r), (0, cols - c)))

    w_mu_f = w_mu.astype(f32)
    w_sigma_f = w_sigma.astype(f32)
    return {
        'w_mu':   pad2(w_mu_f, K_p, n_out_p, compute_dtype),
        'w_sig2': pad2(w_sigma_f * w_sigma_f, K_p, n_out_p, compute_dtype),
        'b_mu':   pad2(b_mu.astype(f32).reshape(1, -1), 1, n_out_p, f32),
        'b_sig2': pad2((b_sigma.astype(f32) ** 2).reshape(1, -1), 1, n_out_p, f32),
        'n_input': int(n_input),
        'n_output': int(n_output),
        'compute_dtype': compute_dtype,
    }


# ----------------------------------------------------------------------------
# Kernel
# ----------------------------------------------------------------------------
def _bnn_kernel(*refs, coef_sample, act_func, compute_dtype, with_noise):
    if with_noise:
        (x_ref, wmu_ref, bmu_ref, wsig2_ref, bsig2_ref, eps_ref,
         out_ref, acc_mean, acc_sig) = refs
    else:
        x_ref, wmu_ref, bmu_ref, out_ref, acc_mean = refs
        acc_sig = None

    k = pl.program_id(2)
    nk = pl.num_programs(2)

    @pl.when(k == 0)
    def _init():
        acc_mean[...] = jnp.zeros_like(acc_mean)
        if with_noise:
            acc_sig[...] = jnp.zeros_like(acc_sig)

    x = x_ref[...]                                   # compute_dtype operand
    # MXU matmuls on compute_dtype operands, f32 accumulation.
    acc_mean[...] += jnp.dot(x, wmu_ref[...],
                             preferred_element_type=jnp.float32)
    if with_noise:
        xf = x.astype(jnp.float32)                   # square on f32 VPU (v5e-safe)
        x_sq = (xf * xf).astype(compute_dtype)
        acc_sig[...] += jnp.dot(x_sq, wsig2_ref[...],
                                preferred_element_type=jnp.float32)

    @pl.when(k == nk - 1)
    def _epilogue():
        out = acc_mean[...] + bmu_ref[...]
        if with_noise:
            sigma_sq = acc_sig[...] + bsig2_ref[...]
            out = out + coef_sample * jnp.sqrt(sigma_sq) * eps_ref[...]
        out_ref[...] = _apply_act(out, act_func).astype(out_ref.dtype)


# ----------------------------------------------------------------------------
# Tile selection (budgeted against ~24 MiB of live VMEM -> v7x-safe)
# ----------------------------------------------------------------------------
def _choose_tiles(B, n_input, n_out_p, itemsize, with_noise,
                  budget_bytes=24 * 1024 * 1024):
    tk, K_p = _k_tiling(n_input)

    B8 = _round_up(max(B, 1), 8)
    bm = B8 if B8 <= 512 else 256          # big batch tiles amortize grid-step cost
    tn = n_out_p                           # start weight-resident (single j step)

    def working_set(bm_, tn_):
        # per pipeline stage; Pallas double-buffers every BlockSpec operand
        w = tk * tn_ * itemsize * (2 if with_noise else 1)
        x = bm_ * tk * itemsize
        eps = bm_ * tn_ * 4 if with_noise else 0
        out = bm_ * tn_ * 4
        bias = 2 * tn_ * 4
        per_stage = w + x + eps + out + bias
        acc = bm_ * tn_ * 4 * (2 if with_noise else 1)
        return 2 * per_stage + acc

    while working_set(bm, tn) > budget_bytes and tn > 128:
        cands = [t for t in (1024, 512, 256, 128) if t < tn and n_out_p % t == 0]
        if not cands:
            break
        tn = cands[0]
    while working_set(bm, tn) > budget_bytes and bm > 8:
        bm = max(8, _round_up(bm // 2, 8))

    B_p = _round_up(B, bm)
    return bm, tk, tn, B_p, K_p, working_set(bm, tn)


# ----------------------------------------------------------------------------
# Forward
# ----------------------------------------------------------------------------
def bnn_forward_prepared(x, prep, *, eps=None, key=None, coef_sample=1.0,
                         act_func='ReLU'):
    """Pallas forward pass using already-prepared (padded/squared/cast) params."""
    B, n_input = x.shape
    assert n_input == prep['n_input']
    n_output = prep['n_output']
    compute_dtype = prep['compute_dtype']
    n_out_p = prep['w_mu'].shape[1]
    f32 = jnp.float32

    coef_sample = float(coef_sample)
    # eval / deterministic mode: drop the whole variance path (no W_sigma^2 /
    # b_sigma^2 / eps DMA, no second matmul, no sqrt, no noise).
    with_noise = coef_sample != 0.0

    itemsize = jnp.dtype(compute_dtype).itemsize
    bm, tk, tn, B_p, K_p, ws_bytes = _choose_tiles(
        B, n_input, n_out_p, itemsize, with_noise)

    # ---- per-call activation prep: cast + pad X only when actually needed ----
    x_p = x.astype(compute_dtype)
    if (B_p, K_p) != (B, n_input):
        x_p = jnp.pad(x_p, ((0, B_p - B), (0, K_p - n_input)))

    eps_p = None
    if with_noise:
        if eps is not None:
            eps_p = eps.astype(f32)
            if eps_p.shape != (B_p, n_out_p):
                eps_p = jnp.pad(eps_p, ((0, B_p - B), (0, n_out_p - n_output)))
        else:
            if key is None:
                key = jax.random.PRNGKey(0)
            # Host-side draw at the padded shape (padded rows/cols are sliced
            # away; padded columns also have sigma == 0).  Host-side noise keeps
            # results independent of the tiling / megacore split.
            eps_p = jax.random.normal(key, (B_p, n_out_p), f32)

    n_i, n_j, n_k = B_p // bm, n_out_p // tn, K_p // tk

    # ---- grid ordering: keep the cheaper-to-hold operand VMEM-resident ----
    # batch-major (i, j, k): X streamed once, weights re-fetched once per batch
    #   tile (and only once in total when n_j == n_k == 1: the weight block
    #   index never changes across the batch sweep).
    # n-major (j, i, k): weights streamed once, X re-fetched once per j tile.
    w_bytes = K_p * n_out_p * itemsize * (2 if with_noise else 1)
    x_bytes = B_p * K_p * itemsize
    batch_major = True
    if n_k == 1 and n_i > 1 and n_j > 1:
        batch_major = w_bytes * (n_i - 1) <= x_bytes * (n_j - 1)

    if batch_major:                      # batch axis first -> v7x megacore splits batch
        grid = (n_i, n_j, n_k)
        x_map = lambda i, j, k: (i, k)
        w_map = lambda i, j, k: (k, j)
        b_map = lambda i, j, k: (0, j)
        o_map = lambda i, j, k: (i, j)
    else:
        grid = (n_j, n_i, n_k)
        x_map = lambda j, i, k: (i, k)
        w_map = lambda j, i, k: (k, j)
        b_map = lambda j, i, k: (0, j)
        o_map = lambda j, i, k: (i, j)

    in_specs = [
        pl.BlockSpec((bm, tk), x_map),          # X
        pl.BlockSpec((tk, tn), w_map),          # W_mu
        pl.BlockSpec((1, tn), b_map),           # b_mu
    ]
    args = [x_p, prep['w_mu'], prep['b_mu']]
    scratch = [pltpu.VMEM((bm, tn), f32)]       # mean accumulator
    if with_noise:
        in_specs += [
            pl.BlockSpec((tk, tn), w_map),      # W_sigma^2
            pl.BlockSpec((1, tn), b_map),       # b_sigma^2
            pl.BlockSpec((bm, tn), o_map),      # eps
        ]
        args += [prep['w_sig2'], prep['b_sig2'], eps_p]
        scratch.append(pltpu.VMEM((bm, tn), f32))   # sigma^2 accumulator

    kernel = functools.partial(
        _bnn_kernel, coef_sample=coef_sample, act_func=act_func,
        compute_dtype=compute_dtype, with_noise=with_noise)

    flops = 2 * B_p * K_p * n_out_p * (2 if with_noise else 1)
    transcendentals = B_p * n_out_p * (
        (1 if with_noise else 0) +
        (1 if act_func in _TRANSCENDENTAL_ACTS else 0))
    bytes_accessed = (B_p * K_p * itemsize + w_bytes + 2 * n_out_p * 4
                      + (B_p * n_out_p * 4 if with_noise else 0)   # eps
                      + B_p * n_out_p * 4)                         # output

    # Tiles were budgeted against ~24 MiB of live VMEM; keep the compiler limit
    # in the 32-40 MiB range so it is still safe on v7x's 64 MiB / TC.
    vmem_limit = int(min(max(ws_bytes * 3 // 2, 32 * 1024 * 1024),
                         40 * 1024 * 1024))

    out = pl.pallas_call(
        kernel,
        out_shape=jax.ShapeDtypeStruct((B_p, n_out_p), f32),
        grid_spec=pltpu.PrefetchScalarGridSpec(
            num_scalar_prefetch=0,
            grid=grid,
            in_specs=in_specs,
            out_specs=pl.BlockSpec((bm, tn), o_map),
            scratch_shapes=scratch),
        compiler_params=pltpu.CompilerParams(
            dimension_semantics=("parallel", "parallel", "arbitrary"),
            vmem_limit_bytes=vmem_limit),
        cost_estimate=pl.CostEstimate(
            flops=int(flops), transcendentals=int(transcendentals),
            bytes_accessed=int(bytes_accessed)),
    )(*args)

    return out[:B, :n_output]


def bnn_local_layer_forward(x, w_mu, b_mu, w_sigma, b_sigma, *, eps=None,
                            key=None, coef_sample=1.0, act_func='ReLU',
                            compute_dtype=jnp.bfloat16):
    """One-shot convenience wrapper mirroring BNN_local_Layer.forward.

    For repeated calls (training loops) build `prep = prepare_bnn_params(...)`
    once and call `bnn_forward_prepared` directly, so the padding / squaring /
    cast of the weights is not redone every step.
    Returns (output, W_mu, b_mu) like the PyTorch module.
    """
    prep = prepare_bnn_params(w_mu, b_mu, w_sigma, b_sigma,
                              compute_dtype=compute_dtype)
    out = bnn_forward_prepared(x, prep, eps=eps, key=key,
                               coef_sample=coef_sample, act_func=act_func)
    return out, w_mu, b_mu


# ----------------------------------------------------------------------------
# Pure-JAX reference + checks
# ----------------------------------------------------------------------------
def _reference_forward(x, w_mu, b_mu, w_sigma, b_sigma, eps, coef_sample,
                       act_func='ReLU'):
    hp = jax.lax.Precision.HIGHEST
    mean = jnp.dot(x, w_mu, precision=hp) + b_mu
    sigma_sq = jnp.dot(x * x, w_sigma * w_sigma, precision=hp) + b_sigma * b_sigma
    out = mean + coef_sample * jnp.sqrt(sigma_sq) * eps
    return _apply_act(out, act_func)


def _check_close(got, want, tol, msg):
    # Scale-aware check (MXU f32 matmuls may be multi-pass; we validate
    # structure, not ulp accuracy).
    err = float(jnp.max(jnp.abs(got - want)))
    scale = 1.0 + float(jnp.max(jnp.abs(want)))
    assert err <= tol * scale, f"{msg}: max_err={err:.3e}, scale={scale:.3e}"


if __name__ == "__main__":
    n_input, n_output = 32, 16
    batch = 8
    init_range = 0.01
    # sigma_prior only enters the module's KL terms (lpw/lqw), not the forward.

    key = jax.random.PRNGKey(0)
    k_x, k_wm, k_bm, k_ws, k_bs, k_eps, k_x2 = jax.random.split(key, 7)

    w_mu = init_range * jax.random.normal(k_wm, (n_input, n_output), jnp.float32)
    b_mu = init_range * jax.random.normal(k_bm, (n_output,), jnp.float32)
    w_sigma = jax.random.uniform(k_ws, (n_input, n_output), jnp.float32)
    b_sigma = jax.random.uniform(k_bs, (n_output,), jnp.float32)

    x = jax.random.normal(k_x, (batch, n_input), jnp.float32)
    eps = jax.random.normal(k_eps, (batch, n_output), jnp.float32)

    # 1) explicit-eps, f32 storage: check vs pure-JAX reference.
    out, w_ret, b_ret = bnn_local_layer_forward(
        x, w_mu, b_mu, w_sigma, b_sigma, eps=eps,
        coef_sample=1.0, act_func='ReLU', compute_dtype=jnp.float32)
    jax.block_until_ready(out)
    ref = _reference_forward(x, w_mu, b_mu, w_sigma, b_sigma, eps, 1.0)
    assert out.shape == (batch, n_output)
    _check_close(out, ref, 2e-2, "f32 mismatch vs reference")
    assert w_ret is w_mu and b_ret is b_mu

    # 2) deterministic / eval mode (coef_sample == 0): the variance path
    #    (second matmul, sqrt, eps stream) is skipped entirely inside the kernel.
    out0, _, _ = bnn_local_layer_forward(
        x, w_mu, b_mu, w_sigma, b_sigma, coef_sample=0.0, act_func='ReLU',
        compute_dtype=jnp.float32)
    jax.block_until_ready(out0)
    ref0 = _reference_forward(x, w_mu, b_mu, w_sigma, b_sigma,
                              jnp.zeros_like(eps), 0.0)
    _check_close(out0, ref0, 2e-2, "eval-path mismatch")

    # 3) sampled path with host-side key (noise drawn outside the kernel, so
    #    results are tiling-invariant); shape / finiteness / ReLU sanity.
    out1, _, _ = bnn_local_layer_forward(
        x, w_mu, b_mu, w_sigma, b_sigma, key=jax.random.PRNGKey(7),
        coef_sample=1.0, act_func='ReLU', compute_dtype=jnp.float32)
    jax.block_until_ready(out1)
    assert out1.shape == (batch, n_output)
    assert bool(jnp.all(jnp.isfinite(out1)))
    assert bool(jnp.all(out1 >= 0.0))

    # 4) unaligned shapes + prepared params cached and reused across two calls.
    B2, ni2, no2 = 40, 48, 300
    x2 = jax.random.normal(k_x2, (B2, ni2), jnp.float32)
    kk = jax.random.split(jax.random.PRNGKey(1), 5)
    w_mu2 = init_range * jax.random.normal(kk[0], (ni2, no2), jnp.float32)
    b_mu2 = init_range * jax.random.normal(kk[1], (no2,), jnp.float32)
    w_sg2 = jax.random.uniform(kk[2], (ni2, no2), jnp.float32)
    b_sg2 = jax.random.uniform(kk[3], (no2,), jnp.float32)
    eps2 = jax.random.normal(kk[4], (B2, no2), jnp.float32)

    prep_f32 = prepare_bnn_params(w_mu2, b_mu2, w_sg2, b_sg2,
                                  compute_dtype=jnp.float32)
    out2 = bnn_forward_prepared(x2, prep_f32, eps=eps2, coef_sample=1.0,
                                act_func='Tanh')
    out2b = bnn_forward_prepared(x2, prep_f32, coef_sample=0.0, act_func='Tanh')
    jax.block_until_ready((out2, out2b))
    ref2 = _reference_forward(x2, w_mu2, b_mu2, w_sg2, b_sg2, eps2, 1.0,
                              act_func='Tanh')
    ref2b = _reference_forward(x2, w_mu2, b_mu2, w_sg2, b_sg2,
                               jnp.zeros((B2, no2), jnp.float32), 0.0,
                               act_func='Tanh')
    assert out2.shape == (B2, no2)
    _check_close(out2, ref2, 2e-2, "tiled sampled-path mismatch")
    _check_close(out2b, ref2b, 2e-2, "tiled eval-path mismatch")

    # 5) bf16 fast path (default): half-width HBM streams + bf16 MXU operands,
    #    f32 accumulation and f32 epilogue; loose tolerance vs f32 reference.
    out3, _, _ = bnn_local_layer_forward(
        x2, w_mu2, b_mu2, w_sg2, b_sg2, eps=eps2, coef_sample=1.0,
        act_func='ReLU')   # compute_dtype defaults to bfloat16
    jax.block_until_ready(out3)
    ref3 = _reference_forward(x2, w_mu2, b_mu2, w_sg2, b_sg2, eps2, 1.0,
                              act_func='ReLU')
    assert out3.shape == (B2, no2)
    assert bool(jnp.all(jnp.isfinite(out3)))
    _check_close(out3, ref3, 8e-2, "bf16 fast path deviates from f32 reference")

    print("KERNEL_OK")
</pallas_src>

<mosaic_0001>
module attributes {stable_mosaic.version = 11 : i64} {
  func.func @_bnn_kernel(%arg0: i32, %arg1: i32, %arg2: i32, %arg3: memref<8x32xf32, #tpu.memory_space<vmem>>, %arg4: memref<32x128xf32, #tpu.memory_space<vmem>>, %arg5: memref<1x128xf32, #tpu.memory_space<vmem>>, %arg6: memref<32x128xf32, #tpu.memory_space<vmem>>, %arg7: memref<1x128xf32, #tpu.memory_space<vmem>>, %arg8: memref<8x128xf32, #tpu.memory_space<vmem>>, %arg9: memref<8x128xf32, #tpu.memory_space<vmem>>, %arg10: memref<8x128xf32, #tpu.memory_space<vmem>>, %arg11: memref<8x128xf32, #tpu.memory_space<vmem>>) attributes {dimension_semantics = [#tpu.dimension_semantics<parallel>, #tpu.dimension_semantics<parallel>, #tpu.dimension_semantics<arbitrary>], iteration_bounds = array<i64: 1, 1, 1>, scalar_prefetch = 0 : i64, scratch_operands = 2 : i64, tpu.core_type = #tpu.core_type<tc>, window_params = [{transform_indices = @transform_0, window_bounds = array<i64: 8, 32>}, {transform_indices = @transform_1, window_bounds = array<i64: 32, 128>}, {transform_indices = @transform_2, window_bounds = array<i64: 1, 128>}, {transform_indices = @transform_3, window_bounds = array<i64: 32, 128>}, {transform_indices = @transform_4, window_bounds = array<i64: 1, 128>}, {transform_indices = @transform_5, window_bounds = array<i64: 8, 128>}, {transform_indices = @transform_6, window_bounds = array<i64: 8, 128>}]} {
    %c0_i32 = arith.constant 0 : i32
    %0 = arith.cmpi eq, %arg2, %c0_i32 : i32
    %1 = arith.extui %0 : i1 to i32
    %c0_i32_0 = arith.constant 0 : i32
    %2 = arith.cmpi ne, %1, %c0_i32_0 : i32
    scf.if %2 {
      %cst_17 = arith.constant 0.000000e+00 : f32
      %18 = vector.broadcast %cst_17 : f32 to vector<8x128xf32>
      %c0_18 = arith.constant 0 : index
      %c0_19 = arith.constant 0 : index
      %19 = vector.load %arg10[%c0_18, %c0_19] : memref<8x128xf32, #tpu.memory_space<vmem>>, vector<8x128xf32>
      tpu.vector_store %arg10[%c0_18, %c0_19], %18 {strides = array<i32>} : memref<8x128xf32, #tpu.memory_space<vmem>>, vector<8x128xf32>,
      %cst_20 = arith.constant 0.000000e+00 : f32
      %20 = vector.broadcast %cst_20 : f32 to vector<8x128xf32>
      %c0_21 = arith.constant 0 : index
      %c0_22 = arith.constant 0 : index
      %21 = vector.load %arg11[%c0_21, %c0_22] : memref<8x128xf32, #tpu.memory_space<vmem>>, vector<8x128xf32>
      tpu.vector_store %arg11[%c0_21, %c0_22], %20 {strides = array<i32>} : memref<8x128xf32, #tpu.memory_space<vmem>>, vector<8x128xf32>,
    } else {
    }
    %c0 = arith.constant 0 : index
    %c0_1 = arith.constant 0 : index
    %3 = vector.load %arg3[%c0, %c0_1] : memref<8x32xf32, #tpu.memory_space<vmem>>, vector<8x32xf32>
    %c0_2 = arith.constant 0 : index
    %c0_3 = arith.constant 0 : index
    %4 = vector.load %arg10[%c0_2, %c0_3] : memref<8x128xf32, #tpu.memory_space<vmem>>, vector<8x128xf32>
    %c0_4 = arith.constant 0 : index
    %c0_5 = arith.constant 0 : index
    %5 = vector.load %arg4[%c0_4, %c0_5] : memref<32x128xf32, #tpu.memory_space<vmem>>, vector<32x128xf32>
    %cst = arith.constant dense<0.000000e+00> : vector<8x128xf32>
    %6 = tpu.matmul %3, %5, %cst {dimension_numbers = #tpu.dot_dimension_numbers<[1], [0], [0], [1], [0, 0, 1, 1], [], []>} : vector<8x32xf32>, vector<32x128xf32>, vector<8x128xf32> -> vector<8x128xf32>
    %7 = arith.addf %4, %6 : vector<8x128xf32>
    %c0_6 = arith.constant 0 : index
    %c0_7 = arith.constant 0 : index
    %8 = vector.load %arg10[%c0_6, %c0_7] : memref<8x128xf32, #tpu.memory_space<vmem>>, vector<8x128xf32>
    tpu.vector_store %arg10[%c0_6, %c0_7], %7 {strides = array<i32>} : memref<8x128xf32, #tpu.memory_space<vmem>>, vector<8x128xf32>,
    %9 = arith.mulf %3, %3 : vector<8x32xf32>
    %c0_8 = arith.constant 0 : index
    %c0_9 = arith.constant 0 : index
    %10 = vector.load %arg11[%c0_8, %c0_9] : memref<8x128xf32, #tpu.memory_space<vmem>>, vector<8x128xf32>
    %c0_10 = arith.constant 0 : index
    %c0_11 = arith.constant 0 : index
    %11 = vector.load %arg6[%c0_10, %c0_11] : memref<32x128xf32, #tpu.memory_space<vmem>>, vector<32x128xf32>
    %cst_12 = arith.constant dense<0.000000e+00> : vector<8x128xf32>
    %12 = tpu.matmul %9, %11, %cst_12 {dimension_numbers = #tpu.dot_dimension_numbers<[1], [0], [0], [1], [0, 0, 1, 1], [], []>} : vector<8x32xf32>, vector<32x128xf32>, vector<8x128xf32> -> vector<8x128xf32>
    %13 = arith.addf %10, %12 : vector<8x128xf32>
    %c0_13 = arith.constant 0 : index
    %c0_14 = arith.constant 0 : index
    %14 = vector.load %arg11[%c0_13, %c0_14] : memref<8x128xf32, #tpu.memory_space<vmem>>, vector<8x128xf32>
    tpu.vector_store %arg11[%c0_13, %c0_14], %13 {strides = array<i32>} : memref<8x128xf32, #tpu.memory_space<vmem>>, vector<8x128xf32>,
    %c0_i32_15 = arith.constant 0 : i32
    %15 = arith.cmpi eq, %arg2, %c0_i32_15 : i32
    %16 = arith.extui %15 : i1 to i32
    %c0_i32_16 = arith.constant 0 : i32
    %17 = arith.cmpi ne, %16, %c0_i32_16 : i32
    scf.if %17 {
      %c0_17 = arith.constant 0 : index
      %c0_18 = arith.constant 0 : index
      %18 = vector.load %arg10[%c0_17, %c0_18] : memref<8x128xf32, #tpu.memory_space<vmem>>, vector<8x128xf32>
      %c0_19 = arith.constant 0 : index
      %c0_20 = arith.constant 0 : index
      %19 = vector.load %arg5[%c0_19, %c0_20] : memref<1x128xf32, #tpu.memory_space<vmem>>, vector<1x128xf32>
      %20 = vector.broadcast %19 : vector<1x128xf32> to vector<8x128xf32>
      %21 = arith.addf %18, %20 : vector<8x128xf32>
      %c0_21 = arith.constant 0 : index
      %c0_22 = arith.constant 0 : index
      %22 = vector.load %arg11[%c0_21, %c0_22] : memref<8x128xf32, #tpu.memory_space<vmem>>, vector<8x128xf32>
      %c0_23 = arith.constant 0 : index
      %c0_24 = arith.constant 0 : index
      %23 = vector.load %arg7[%c0_23, %c0_24] : memref<1x128xf32, #tpu.memory_space<vmem>>, vector<1x128xf32>
      %24 = vector.broadcast %23 : vector<1x128xf32> to vector<8x128xf32>
      %25 = arith.addf %22, %24 : vector<8x128xf32>
      %26 = math.sqrt %25 : vector<8x128xf32>
      %cst_25 = arith.constant 1.000000e+00 : f32
      %27 = vector.broadcast %cst_25 : f32 to vector<8x128xf32>
      %28 = arith.mulf %27, %26 : vector<8x128xf32>
      %c0_26 = arith.constant 0 : index
      %c0_27 = arith.constant 0 : index
      %29 = vector.load %arg8[%c0_26, %c0_27] : memref<8x128xf32, #tpu.memory_space<vmem>>, vector<8x128xf32>
      %30 = arith.mulf %28, %29 : vector<8x128xf32>
      %31 = arith.addf %21, %30 : vector<8x128xf32>
      %cst_28 = arith.constant 0.000000e+00 : f32
      %32 = vector.broadcast %cst_28 : f32 to vector<8x128xf32>
      %33 = arith.maximumf %31, %32 : vector<8x128xf32>
      %c0_29 = arith.constant 0 : index
      %c0_30 = arith.constant 0 : index
      %34 = vector.load %arg9[%c0_29, %c0_30] : memref<8x128xf32, #tpu.memory_space<vmem>>, vector<8x128xf32>
      tpu.vector_store %arg9[%c0_29, %c0_30], %33 {strides = array<i32>} : memref<8x128xf32, #tpu.memory_space<vmem>>, vector<8x128xf32>,
    } else {
    }
    return
  }
  func.func @transform_0(%arg0: i32, %arg1: i32, %arg2: i32) -> (i32, i32) {
    %c0_i32 = arith.constant 0 : i32
    return %arg0, %arg2 : i32, i32
  }
  func.func @transform_1(%arg0: i32, %arg1: i32, %arg2: i32) -> (i32, i32) {
    %c0_i32 = arith.constant 0 : i32
    return %arg2, %arg1 : i32, i32
  }
  func.func @transform_2(%arg0: i32, %arg1: i32, %arg2: i32) -> (i32, i32) {
    %c0_i32 = arith.constant 0 : i32
    %c0_i32_0 = arith.constant 0 : i32
    return %c0_i32, %arg1 : i32, i32
  }
  func.func @transform_3(%arg0: i32, %arg1: i32, %arg2: i32) -> (i32, i32) {
    %c0_i32 = arith.constant 0 : i32
    return %arg2, %arg1 : i32, i32
  }
  func.func @transform_4(%arg0: i32, %arg1: i32, %arg2: i32) -> (i32, i32) {
    %c0_i32 = arith.constant 0 : i32
    %c0_i32_0 = arith.constant 0 : i32
    return %c0_i32, %arg1 : i32, i32
  }
  func.func @transform_5(%arg0: i32, %arg1: i32, %arg2: i32) -> (i32, i32) {
    %c0_i32 = arith.constant 0 : i32
    return %arg0, %arg1 : i32, i32
  }
  func.func @transform_6(%arg0: i32, %arg1: i32, %arg2: i32) -> (i32, i32) {
    %c0_i32 = arith.constant 0 : i32
    return %arg0, %arg1 : i32, i32
  }
}

</mosaic_0001>

<bundles_post_ra>
// kernel: tpu_custom_call.1
= control target key start
LH: loop header
LB: loop body
LE: loop exit
PB: predicated region body
PF: predicated region fallthrough
CT: control target
= control target key end

     0   :  { %11 = vsyncpa [#allocation5], 0  ;;  %s407_s0 = inlined_call_operand.hbm [shape: f32[8,32], index: 0, kind: input, shape index: {}]   ;;  %s408_s1 = inlined_call_operand.hbm [shape: f32[32,128], index: 1, kind: input, shape index: {}]   ;;  %s409_s2 = inlined_call_operand.vmem [shape: f32[1,128], index: 2, kind: input, shape index: {}]   ;;  %s410_s3 = inlined_call_operand.hbm [shape: f32[32,128], index: 3, kind: input, shape index: {}]   ;;  %s411_s4 = inlined_call_operand.vmem [shape: f32[1,128], index: 4, kind: input, shape index: {}]   ;;  %s412_s5 = inlined_call_operand.hbm [shape: f32[8,128], index: 5, kind: input, shape index: {}]   ;;  %s413_s6 = inlined_call_operand.hbm [shape: f32[8,128], index: 6, kind: output, shape index: {}]  }
   0x1   :  { %12 = vsyncpa [#allocation8], 0 }
   0x2   :  { %13 = vsyncpa [#allocation11], 0  ;;  %s30_s23 = sshll.u32 %s408_s1, 4  ;;  %s31_s23 = int_to_ptr.hbm [resolvable:$true] %s30_s23 }
   0x3   :  { %14 = vsyncpa [#allocation6], 0  ;;  %s344_s24 = smov [#allocation7]   ;;  %s20_s28 = sshll.u32 %s407_s0, 4  ;;  %s21_s28 = int_to_ptr.hbm [resolvable:$true] %s20_s28 }
   0x4   :  { %s32_s25 = sshll.u32 %s344_s24, 4  ;;  %s345_s29 = smov 128   ;;  %s33_s25 = int_to_ptr.vmem [resolvable:$true] %s32_s25 }
   0x5   :  { %s346_s30 = smov 8   ;;  %s347_s7 = smov [#allocation4]  }
   0x6   :  { %38 = dma.hbm_to_vmem [thread:$0]  %s31_s23, 512, %s33_s25, [#allocation8], %s345_s29, %s345_s29, %s346_s30  }
   0x7   :  { %s22_s8 = sshll.u32 %s347_s7, 4  ;;  %s45_s11 = sshll.u32 %s410_s3, 4  ;;  %s23_s8 = int_to_ptr.vmem [resolvable:$true] %s22_s8  ;;  %s46_s11 = int_to_ptr.hbm [resolvable:$true] %s45_s11 }
   0x8   :  { %25 = dma.hbm_to_vmem [thread:$0]  %s21_s28, 128, %s23_s8, [#allocation5]  }
   0x9   :  { %s61_s13 = sshll.u32 %s412_s5, 4  ;;  %s348_s14 = smov [#allocation9]   ;;  %s62_s13 = int_to_ptr.hbm [resolvable:$true] %s61_s13 }
   0xa   :  { %s47_s15 = sshll.u32 %s348_s14, 4  ;;  %s349_s0 = smov [#allocation10]   ;;  %s48_s15 = int_to_ptr.vmem [resolvable:$true] %s47_s15 }
   0xb   :  { %53 = dma.hbm_to_vmem [thread:$0]  %s46_s11, 512, %s48_s15, [#allocation8], %s345_s29, %s345_s29, %s346_s30  }
   0xc   :  { %s63_s16 = sshll.u32 %s349_s0, 4  ;;  %s64_s16 = int_to_ptr.vmem [resolvable:$true] %s63_s16 }
   0xd   :  { %66 = dma.hbm_to_vmem [thread:$0]  %s62_s13, 128, %s64_s16, [#allocation11]  }
   0xe   :  { %336 = dma.done.wait [#allocation5], 128  }
   0xf   :  { %337 = vsyncadd [#allocation5], 4294967168 }
  0x10   :  { %338 = dma.done.wait [#allocation8], 1024  }
  0x11   :  { %339 = vsyncadd [#allocation8], 4294966272 }
  0x12   :  { %340 = dma.done.wait [#allocation11], 128  }
  0x13   :  { %341 = vsyncadd [#allocation11], 4294967168  ;;  %v126_v0 = vld [vmem:[#allocation9 + $0x18] sm:$0xff]  ;;  %v125_v1 = vld [vmem:[#allocation9 + $0x10] sm:$0xff]  ;;  %vm95_vm0 = vcmask 261120   ;;  %s191_s22 = sshll.u32 %s413_s6, 4  ;;  %s192_s22 = int_to_ptr.hbm [resolvable:$true] %s191_s22 }
  0x14   :  { %142 = vmatpush.msra.mxu1 %v126_v0  ;;  %v89_v2 = vld [vmem:[#allocation4] sm:$0xff]  ;;  %v124_v4 = vld [vmem:[#allocation9 + $0x8] sm:$0xff]  ;;  %v93_v5 = vld [vmem:[#allocation7 + $0x10] sm:$0xff] }
  0x15   :  { %v94_v3 = vld [vmem:[#allocation7 + $0x18] sm:$0xff]  ;;  %v92_v6 = vld [vmem:[#allocation7 + $0x8] sm:$0xff]  ;;  %v123_v7 = vld [vmem:[#allocation9] sm:$0xff]  ;;  %v121_v8 = vmul.f32 %v89_v2, %v89_v2 }
  0x16   :  { %111 = vmatpush.msra.mxu0 %v94_v3  ;;  %143 = vmatpush.msra.mxu1 %v125_v1  ;;  %v91_v9 = vld [vmem:[#allocation7] sm:$0xff]  ;;  %v212_v10 = vld [vmem:[%s411_s4] ss:$0 sm:$0xff]  ;;  %s350_s4 = smov [#allocation12]  }
  0x17   :  { %v213_v18 = vld [vmem:[%s409_s2] ss:$0 sm:$0xff]  ;;  %v179_v23 = vld [vmem:[#allocation10] sm:$0xff]  ;;  %s189_s19 = sshll.u32 %s350_s4, 4  ;;  %s190_s19 = int_to_ptr.vmem [resolvable:$true] %s189_s19 }
  0x18   :  { %112 = vmatpush.msra.mxu0 %v93_v5  ;;  %144 = vmatpush.msra.mxu1 %v124_v4 }
  0x1a   :  { %113 = vmatpush.msra.mxu0 %v92_v6  ;;  %145 = vmatpush.msra.mxu1 %v123_v7 }
  0x1b   :  { %204 = vmatmul.msk.f32.vlgmr.msra.gmra.mxu1 %vm95_vm0, %v121_v8 }
  0x1c   :  { %114 = vmatpush.msra.mxu0 %v91_v9 }
  0x1d   :  { %203 = vmatmul.msk.f32.vlgmr.msra.gmra.mxu0 %vm95_vm0, %v89_v2 }
  0x98   :  { %v147_v11 = vpop.f32.mrf.mxu1 }
  0x99   :  { %v166_v12 = vadd.f32 %v212_v10, %v147_v11 }
  0x9a   :  { %v116_v20 = vpop.f32.mrf.mxu0 }
  0x9b   :  { %214 = vrsqrt.f32 %v166_v12  ;;  %vm174_vm1 = vcmp.eq.f32.partialorder %v166_v12, inf  ;;  %v177_v22 = vand.u32 2147483648, %v166_v12  ;;  %v160_v24 = vadd.f32 %v213_v18, %v116_v20 }
  0x9c   :  { %vm176_vm2 = vcmp.eq.f32.partialorder %v166_v12, 0.0 }
  0xa1   :  { %v215_v13 = vpop.eup %214 }
  0xa2   :  { %v168_v14 = vmul.f32 %v215_v13, %v166_v12 }
  0xa4   :  { %v169_v15 = vmul.f32 %v215_v13, %v168_v14 }
  0xa6   :  { %v170_v16 = vmul.f32 0.5, %v169_v15 }
  0xa8   :  { %v171_v17 = vsub.f32 1.5, %v170_v16 }
  0xaa   :  { %v172_v19 = vmul.f32 %v215_v13, %v171_v17 }
  0xac   :  { %v173_v21 = vmul.f32 %v172_v19, %v166_v12 }
  0xae   :  { %v175_v25 = vsel %vm174_vm1, %v166_v12, %v173_v21 }
  0xaf   :  { %v178_v26 = vsel %vm176_vm2, %v177_v22, %v175_v25 }
  0xb0   :  { %v180_v27 = vmul.f32 %v179_v23, %v178_v26 }
  0xb2   :  { %v181_v28 = vadd.f32 %v180_v27, %v160_v24 }
  0xb4   :  { %v182_v29 = vmax.f32 %v181_v28, 0.0 }
  0xb6   :  { %183 = vst [vmem:[#allocation12] sm:$0xff] %v182_v29 }
  0xb7   :  { %194 = dma.vmem_to_hbm [thread:$0]  %s190_s19, 128, %s192_s22, [#allocation6]  }
  0xb8   :  { %342 = dma.done.wait [#allocation6], 128  }
  0xb9   :  { %343 = vsyncadd [#allocation6], 4294967168 }
  0xba   :  { %199 = vsyncpa [#allocation5], 1 }
  0xbb   :  { %200 = vsyncpa [#allocation8], 1 }
  0xbc   :  { %201 = vsyncpa [#allocation11], 1 }
  0xbd   :  { %202 = vsyncpa [#allocation6], 1 }

</bundles_post_ra>
